<compile_context>
chip_gen: v7x
topology: tpu7x:2x2x1
jax: 0.10.0
libtpu: 0.0.40
codegen_flags: <defaults>
</compile_context>

<pallas_src>
import functools

import numpy as np
import jax
import jax.numpy as jnp
from jax import lax
from jax.experimental import pallas as pl
from jax.experimental.pallas import tpu as pltpu

LRELU_SLOPE = 0.2
EPS = 1e-5
VMEM_LIMIT_BYTES = 32 * 1024 * 1024        # <= default scoped VMEM on v6e/v7x, > v5e default
TILE_BUDGET_BYTES = 20 * 1024 * 1024       # double-buffered activation+output tiles


def _mosaic_params():
    return pltpu.CompilerParams(
        dimension_semantics=("parallel",),
        vmem_limit_bytes=VMEM_LIMIT_BYTES,
    )


def _apply_act(act, y):
    if act == "relu":
        return jnp.maximum(y, 0.0)
    if act == "lrelu":
        return jnp.where(y >= 0, y, LRELU_SLOPE * y)
    if act == "tanh":
        return jnp.tanh(y)
    if act == "none":
        return y
    # TODO(synk): 'prelu' / 'selu' activations of Conv2dBlock are not used by StylelessGen.
    raise NotImplementedError(f"activation {act}")


# ----------------------------- Pallas kernels ------------------------------ #

def _matmul_bias_act_kernel(act, a_ref, w_ref, b_ref, o_ref):
    """Fused (im2col-patch tile @ weight) + bias + activation on the MXU/VPU."""
    acc = jnp.dot(a_ref[...], w_ref[...], preferred_element_type=jnp.float32)
    acc = acc + b_ref[...]                      # (1, Cout) broadcast, cheap in-kernel VPU add
    acc = _apply_act(act, acc)
    o_ref[...] = acc.astype(o_ref.dtype)


def _instance_norm_act_kernel(act, eps, x_ref, o_ref):
    """Per-sample InstanceNorm2d (affine=False) fused with the following activation.

    Block: (1, H*W, C) -> normalize each channel over H*W."""
    x = x_ref[...]                              # (1, HW, C)
    mean = jnp.mean(x, axis=1, keepdims=True)
    var = jnp.mean(jnp.square(x - mean), axis=1, keepdims=True)
    y = (x - mean) * lax.rsqrt(var + eps)
    o_ref[...] = _apply_act(act, y).astype(o_ref.dtype)


def _instance_norm_add_kernel(eps, x_ref, r_ref, o_ref):
    """InstanceNorm (no activation) fused with the ResBlock residual add."""
    x = x_ref[...]                              # (1, HW, C)
    mean = jnp.mean(x, axis=1, keepdims=True)
    var = jnp.mean(jnp.square(x - mean), axis=1, keepdims=True)
    y = (x - mean) * lax.rsqrt(var + eps)
    o_ref[...] = (y + r_ref[...]).astype(o_ref.dtype)


def _layer_norm_act_kernel(act, eps, n_elems, x_ref, g_ref, b_ref, o_ref):
    """Custom LayerNorm from the module: per-sample mean/std (unbiased, ddof=1) over
    all C*H*W elements, x_norm = (x-mean)/(std+eps), per-channel affine, then act."""
    x = x_ref[...]                              # (1, HW, C)
    m = jnp.sum(x) / n_elems
    ss = jnp.sum(jnp.square(x - m))
    std = jnp.sqrt(ss / (n_elems - 1))
    y = (x - m) / (std + eps)
    y = y * g_ref[...] + b_ref[...]             # (1, C) broadcast
    o_ref[...] = _apply_act(act, y).astype(o_ref.dtype)


# ------------------------------ JAX glue ----------------------------------- #

def _round_up(x, m):
    return (x + m - 1) // m * m


def _choose_tile_m(m_rows, k, cout):
    """Largest M-tile (multiple of 8, capped at 1024 rows) whose double-buffered
    activation tile + output tile fit the VMEM budget (works across v5e/v6e/v7x)."""
    per_row_bytes = 2 * 4 * (k + cout)          # 2x buffering, f32
    tile = max(8, min(1024, TILE_BUDGET_BYTES // max(per_row_bytes, 1)))
    tile = max(8, (tile // 8) * 8)
    if m_rows <= tile:
        return _round_up(m_rows, 8)
    return tile


def _im2col(x, kh, kw, stride):
    """x: (N, H, W, C) -> patches (N, Ho, Wo, kh*kw, C)."""
    n, h, w, c = x.shape
    ho = (h - kh) // stride + 1
    wo = (w - kw) // stride + 1
    cols = []
    for i in range(kh):
        for j in range(kw):
            cols.append(x[:, i:i + stride * ho:stride, j:j + stride * wo:stride, :])
    p = jnp.stack(cols, axis=3)
    return p, (n, ho, wo, c)


def _matmul_bias_act(a, w_mat, b_row, act):
    """Gridded, double-buffered (M, K) @ (K, Cout) + bias + activation."""
    m_rows, k = a.shape
    cout = w_mat.shape[1]
    tm = _choose_tile_m(m_rows, k, cout)
    m_pad = _round_up(m_rows, tm)
    if m_pad != m_rows:
        a = jnp.pad(a, ((0, m_pad - m_rows), (0, 0)))
    out = pl.pallas_call(
        functools.partial(_matmul_bias_act_kernel, act),
        out_shape=jax.ShapeDtypeStruct((m_pad, cout), jnp.float32),
        grid=(m_pad // tm,),
        in_specs=[
            pl.BlockSpec((tm, k), lambda i: (i, 0)),        # activation tile (pipelined)
            pl.BlockSpec((k, cout), lambda i: (0, 0)),      # full weight, resident
            pl.BlockSpec((1, cout), lambda i: (0, 0)),      # bias row, resident
        ],
        out_specs=pl.BlockSpec((tm, cout), lambda i: (i, 0)),
        compiler_params=_mosaic_params(),
    )(a, w_mat, b_row)
    if m_pad != m_rows:
        out = out[:m_rows]
    return out


def _norm_act(y_nhwc, op, residual=None):
    """Fused norm + activation (+ residual add) Pallas call, grid over the batch."""
    n, h, w, c = y_nhwc.shape
    hw = h * w
    x = y_nhwc.reshape(n, hw, c)
    sample_spec = pl.BlockSpec((1, hw, c), lambda i: (i, 0, 0))
    if op["norm"] == "in":
        if residual is not None:
            r = residual.reshape(n, hw, c)
            out = pl.pallas_call(
                functools.partial(_instance_norm_add_kernel, EPS),
                out_shape=jax.ShapeDtypeStruct((n, hw, c), jnp.float32),
                grid=(n,),
                in_specs=[sample_spec, sample_spec],
                out_specs=sample_spec,
                compiler_params=_mosaic_params(),
            )(x, r)
        else:
            out = pl.pallas_call(
                functools.partial(_instance_norm_act_kernel, op["act"], EPS),
                out_shape=jax.ShapeDtypeStruct((n, hw, c), jnp.float32),
                grid=(n,),
                in_specs=[sample_spec],
                out_specs=sample_spec,
                compiler_params=_mosaic_params(),
            )(x)
    elif op["norm"] == "ln":
        g = op["gamma"].reshape(1, c)
        b = op["beta"].reshape(1, c)
        vec_spec = pl.BlockSpec((1, c), lambda i: (0, 0))
        out = pl.pallas_call(
            functools.partial(_layer_norm_act_kernel, op["act"], EPS, hw * c),
            out_shape=jax.ShapeDtypeStruct((n, hw, c), jnp.float32),
            grid=(n,),
            in_specs=[sample_spec, vec_spec, vec_spec],
            out_specs=sample_spec,
            compiler_params=_mosaic_params(),
        )(x, g, b)
    else:
        raise NotImplementedError(op["norm"])
    return out.reshape(n, h, w, c)


def conv2d_block(x, op, pad_type, residual=None):
    """Conv2dBlock: pad -> conv(+bias) -> norm -> activation [-> +residual]."""
    w, b = op["w"], op["b"]
    pad, stride = op["pad"], op["stride"]
    if pad > 0:
        mode = {"zero": "constant", "reflect": "reflect", "replicate": "edge"}[pad_type]
        x = jnp.pad(x, ((0, 0), (pad, pad), (pad, pad), (0, 0)), mode=mode)
    cout, cin, kh, kw = w.shape
    # TODO(synk): build patches per-tile inside the kernel to avoid the kh*kw-inflated
    # im2col slab in HBM (tap-decomposed accumulation); wrapper-side im2col for now.
    p, (n, ho, wo, _) = _im2col(x, kh, kw, stride)
    a = p.reshape(n * ho * wo, kh * kw * cin)
    w_mat = jnp.transpose(w, (2, 3, 1, 0)).reshape(kh * kw * cin, cout)
    b_row = b.reshape(1, cout)
    fused_act = op["act"] if op["norm"] == "none" else "none"
    y = _matmul_bias_act(a, w_mat, b_row, fused_act).reshape(n, ho, wo, cout)
    if op["norm"] == "none":
        assert residual is None
        return y
    return _norm_act(y, op, residual=residual)


def upsample_nearest_2x(x):
    """nn.Upsample(scale_factor=2), mode='nearest', NHWC."""
    x = jnp.repeat(x, 2, axis=1)
    return jnp.repeat(x, 2, axis=2)


# --------------------------- StylelessGen params ---------------------------- #

def build_styleless_gen_params(key, input_dim, cfg):
    """Synthetic parameters; op list mirrors ContentEncoder + Decoder of StylelessGen
    (input_dim=3 path). Conv2dBlock norms used: 'in', 'ln', 'none'."""
    dim, n_down, n_res = cfg["dim"], cfg["n_downsample"], cfg["n_res"]
    activ = cfg["activ"]

    def make_conv(key, cin, cout, k, s, p, norm, act):
        key, k1, k2, k3 = jax.random.split(key, 4)
        w = jax.random.normal(k1, (cout, cin, k, k), jnp.float32) / np.sqrt(cin * k * k)
        b = 0.01 * jax.random.normal(k2, (cout,), jnp.float32)
        gamma = beta = None
        if norm == "ln":
            gamma = jax.random.uniform(k3, (cout,), jnp.float32)
            beta = jnp.zeros((cout,), jnp.float32)
        return key, dict(kind="conv", w=w, b=b, stride=s, pad=p, norm=norm,
                         act=act, gamma=gamma, beta=beta)

    ops = []
    # ---- ContentEncoder(n_down, n_res, input_dim, dim, norm='in', activ, pad_type) ----
    d = dim
    key, op = make_conv(key, input_dim, d, 7, 1, 3, "in", activ); ops.append(op)
    for _ in range(n_down):
        key, op = make_conv(key, d, 2 * d, 4, 2, 1, "in", activ); ops.append(op)
        d *= 2
    enc_dim = d
    for _ in range(n_res):
        key, c1 = make_conv(key, d, d, 3, 1, 1, "in", activ)
        key, c2 = make_conv(key, d, d, 3, 1, 1, "in", "none")
        ops.append(dict(kind="res", conv1=c1, conv2=c2))
    key, op = make_conv(key, d, 8, 3, 1, 1, "none", activ); ops.append(op)

    # ---- Decoder(n_up=n_down, n_res, dim=enc_dim, out=input_dim, res_norm='in') ----
    d = enc_dim
    key, op = make_conv(key, 8, d, 3, 1, 1, "none", activ); ops.append(op)
    for _ in range(n_res):
        key, c1 = make_conv(key, d, d, 3, 1, 1, "in", activ)
        key, c2 = make_conv(key, d, d, 3, 1, 1, "in", "none")
        ops.append(dict(kind="res", conv1=c1, conv2=c2))
    for _ in range(n_down):
        ops.append(dict(kind="upsample"))
        key, op = make_conv(key, d, d // 2, 5, 1, 2, "ln", activ); ops.append(op)
        d //= 2
    key, op = make_conv(key, d, input_dim, 7, 1, 3, "none", "tanh"); ops.append(op)
    return ops


# --------------------------- StylelessGen forward --------------------------- #

def styleless_gen_forward(x_nchw, ops, pad_type):
    x = jnp.transpose(x_nchw, (0, 2, 3, 1)).astype(jnp.float32)   # NCHW -> NHWC
    for op in ops:
        if op["kind"] == "conv":
            x = conv2d_block(x, op, pad_type)
        elif op["kind"] == "res":
            r = x
            x = conv2d_block(x, op["conv1"], pad_type)
            x = conv2d_block(x, op["conv2"], pad_type, residual=r)   # IN + residual fused
        elif op["kind"] == "upsample":
            x = upsample_nearest_2x(x)
        else:
            raise NotImplementedError(op["kind"])
    return jnp.transpose(x, (0, 3, 1, 2))                          # back to NCHW


# --------------------------- pure-JAX reference ----------------------------- #

def _ref_conv_block(x, op, pad_type):
    pad = op["pad"]
    if pad > 0:
        mode = {"zero": "constant", "reflect": "reflect", "replicate": "edge"}[pad_type]
        x = jnp.pad(x, ((0, 0), (pad, pad), (pad, pad), (0, 0)), mode=mode)
    wt = jnp.transpose(op["w"], (2, 3, 1, 0))                      # OIHW -> HWIO
    y = lax.conv_general_dilated(x, wt, (op["stride"],) * 2, "VALID",
                                 dimension_numbers=("NHWC", "HWIO", "NHWC"))
    y = y + op["b"]
    if op["norm"] == "in":
        m = jnp.mean(y, axis=(1, 2), keepdims=True)
        v = jnp.mean(jnp.square(y - m), axis=(1, 2), keepdims=True)
        y = (y - m) / jnp.sqrt(v + EPS)
    elif op["norm"] == "ln":
        n = y.shape[0]
        flat = y.reshape(n, -1)
        m = flat.mean(axis=1).reshape(n, 1, 1, 1)
        std = jnp.std(flat, axis=1, ddof=1).reshape(n, 1, 1, 1)
        y = (y - m) / (std + EPS)
        y = y * op["gamma"].reshape(1, 1, 1, -1) + op["beta"].reshape(1, 1, 1, -1)
    return _apply_act(op["act"], y)


def ref_forward(x_nchw, ops, pad_type):
    x = jnp.transpose(x_nchw, (0, 2, 3, 1)).astype(jnp.float32)
    for op in ops:
        if op["kind"] == "conv":
            x = _ref_conv_block(x, op, pad_type)
        elif op["kind"] == "res":
            r = x
            h = _ref_conv_block(x, op["conv1"], pad_type)
            h = _ref_conv_block(h, op["conv2"], pad_type)
            x = h + r
        else:
            x = upsample_nearest_2x(x)
    return jnp.transpose(x, (0, 3, 1, 2))


# ---------------------------------- main ------------------------------------ #

if __name__ == "__main__":
    cfg = dict(dim=8, n_downsample=2, n_res=2, activ="relu", pad_type="reflect")
    input_dim = 3                                  # -> ContentEncoder path of StylelessGen

    key = jax.random.PRNGKey(0)
    k_x, k_p = jax.random.split(key)
    x = jax.random.normal(k_x, (2, input_dim, 16, 16), jnp.float32)  # NCHW like PyTorch
    ops = build_styleless_gen_params(k_p, input_dim, cfg)

    out = styleless_gen_forward(x, ops, cfg["pad_type"])
    out = jax.block_until_ready(out)
    assert tuple(out.shape) == (2, input_dim, 16, 16), out.shape

    ref = jax.block_until_ready(ref_forward(x, ops, cfg["pad_type"]))
    np.testing.assert_allclose(np.asarray(out), np.asarray(ref), atol=2e-3, rtol=2e-3)

    print("KERNEL_OK")
</pallas_src>

<mosaic_0001>
module attributes {stable_mosaic.version = 11 : i64} {
  func.func @_matmul_bias_act_kernel(%arg0: i32, %arg1: memref<512x147xf32, #tpu.memory_space<vmem>>, %arg2: memref<147x8xf32, #tpu.memory_space<vmem>>, %arg3: memref<1x8xf32, #tpu.memory_space<vmem>>, %arg4: memref<512x8xf32, #tpu.memory_space<vmem>>) attributes {dimension_semantics = [#tpu.dimension_semantics<parallel>], iteration_bounds = array<i64: 1>, scalar_prefetch = 0 : i64, scratch_operands = 0 : i64, tpu.core_type = #tpu.core_type<tc>, window_params = [{transform_indices = @transform_0, window_bounds = array<i64: 512, 147>}, {pipeline_mode = #tpu.pipeline_mode<synchronous>, transform_indices = @transform_1, window_bounds = array<i64: 147, 8>}, {pipeline_mode = #tpu.pipeline_mode<synchronous>, transform_indices = @transform_2, window_bounds = array<i64: 1, 8>}, {transform_indices = @transform_3, window_bounds = array<i64: 512, 8>}]} {
    %c0 = arith.constant 0 : index
    %c0_0 = arith.constant 0 : index
    %0 = vector.load %arg1[%c0, %c0_0] : memref<512x147xf32, #tpu.memory_space<vmem>>, vector<512x147xf32>
    %c0_1 = arith.constant 0 : index
    %c0_2 = arith.constant 0 : index
    %1 = vector.load %arg2[%c0_1, %c0_2] : memref<147x8xf32, #tpu.memory_space<vmem>>, vector<147x8xf32>
    %cst = arith.constant dense<0.000000e+00> : vector<512x8xf32>
    %2 = tpu.matmul %0, %1, %cst {dimension_numbers = #tpu.dot_dimension_numbers<[1], [0], [0], [1], [0, 0, 1, 1], [], []>} : vector<512x147xf32>, vector<147x8xf32>, vector<512x8xf32> -> vector<512x8xf32>
    %c0_3 = arith.constant 0 : index
    %c0_4 = arith.constant 0 : index
    %3 = vector.load %arg3[%c0_3, %c0_4] : memref<1x8xf32, #tpu.memory_space<vmem>>, vector<1x8xf32>
    %4 = vector.broadcast %3 : vector<1x8xf32> to vector<512x8xf32>
    %5 = arith.addf %2, %4 : vector<512x8xf32>
    %c0_5 = arith.constant 0 : index
    %c0_6 = arith.constant 0 : index
    %6 = vector.load %arg4[%c0_5, %c0_6] : memref<512x8xf32, #tpu.memory_space<vmem>>, vector<512x8xf32>
    tpu.vector_store %arg4[%c0_5, %c0_6], %5 {strides = array<i32>} : memref<512x8xf32, #tpu.memory_space<vmem>>, vector<512x8xf32>,
    return
  }
  func.func @transform_0(%arg0: i32) -> (i32, i32) {
    %c0_i32 = arith.constant 0 : i32
    %c0_i32_0 = arith.constant 0 : i32
    return %arg0, %c0_i32 : i32, i32
  }
  func.func @transform_1(%arg0: i32) -> (i32, i32) {
    %c0_i32 = arith.constant 0 : i32
    %c0_i32_0 = arith.constant 0 : i32
    %c0_i32_1 = arith.constant 0 : i32
    return %c0_i32, %c0_i32_0 : i32, i32
  }
  func.func @transform_2(%arg0: i32) -> (i32, i32) {
    %c0_i32 = arith.constant 0 : i32
    %c0_i32_0 = arith.constant 0 : i32
    %c0_i32_1 = arith.constant 0 : i32
    return %c0_i32, %c0_i32_0 : i32, i32
  }
  func.func @transform_3(%arg0: i32) -> (i32, i32) {
    %c0_i32 = arith.constant 0 : i32
    %c0_i32_0 = arith.constant 0 : i32
    return %arg0, %c0_i32 : i32, i32
  }
}

</mosaic_0001>

<bundles_post_ra>
// kernel: tpu_custom_call.1
= control target key start
LH: loop header
LB: loop body
LE: loop exit
PB: predicated region body
PF: predicated region fallthrough
CT: control target
= control target key end

     0   :  { %v934_v0 = vmov 0.0|0.0   ;;  %vm168_vm0 = vcmask 154624   ;;  %v935_v30 = vmov 0.0   ;;  %vm361_vm1 = vcmask 1042432   ;;  %s1804_s1 = inlined_call_operand.vmem [shape: f32[147,8], index: 1, kind: input, shape index: {}]   ;;  %s1805_s0 = inlined_call_operand.vmem [shape: f32[512,147], index: 0, kind: input, shape index: {}]   ;;  %s1806_s2 = inlined_call_operand.vmem [shape: f32[1,8], index: 2, kind: input, shape index: {}]   ;;  %s1807_s3 = inlined_call_operand.vmem [shape: f32[512,8], index: 3, kind: output, shape index: {}]  }
   0x1   :  { %885 = vmatprep.subr.bf16.mxu0 %v934_v0  ;;  %912 = vmatprep.subr.bf16.mxu1 %v934_v0  ;;  %v142_v1 = vld [vmem:[%s1804_s1] sm:$0xff]  ;;  %v143_v2 = vld [vmem:[%s1804_s1 + $0x8] sm:$0xff]  ;;  %v144_v3 = vld [vmem:[%s1804_s1 + $0x10] sm:$0xff]  ;;  %vm750_vm2 = vcmask 64512  }
   0x2   :  { %v886_v4 = vpack.c.bf16 %v143_v2, %v142_v1  ;;  %v145_v5 = vld [vmem:[%s1804_s1 + $0x18] sm:$0xff]  ;;  %v146_v7 = vld [vmem:[%s1804_s1 + $0x20] sm:$0xff]  ;;  %v147_v8 = vld [vmem:[%s1804_s1 + $0x28] sm:$0xff] }
   0x3   :  { %v889_v6 = vpack.c.bf16 %v145_v5, %v144_v3  ;;  %v15_v9 = vld [vmem:[%s1805_s0 + $0x8] sm:$0xff]  ;;  %v892_v11 = vpack.c.bf16 %v147_v8, %v146_v7  ;;  %v148_v12 = vld [vmem:[%s1804_s1 + $0x30] sm:$0xff]  ;;  %v149_v13 = vld [vmem:[%s1804_s1 + $0x38] sm:$0xff] }
   0x4   :  { %887 = vmatpush1.bf16.msra.mxu0 %v886_v4  ;;  %922 = vmatpush1.bf16.msra.mxu1 %v886_v4  ;;  %v79_v10 = vld [vmem:[%s1805_s0 + $0x208] sm:$0xff]  ;;  %v895_v14 = vpack.c.bf16 %v149_v13, %v148_v12  ;;  %v150_v15 = vld [vmem:[%s1804_s1 + $0x40] sm:$0xff]  ;;  %v152_v18 = vld [vmem:[%s1804_s1 + $0x50] sm:$0xff] }
   0x5   :  { %888 = vmatprep.subr.bf16.mxu0 %v934_v0  ;;  %913 = vmatprep.subr.bf16.mxu1 %v934_v0  ;;  %v151_v16 = vld [vmem:[%s1804_s1 + $0x48] sm:$0xff]  ;;  %v153_v19 = vld [vmem:[%s1804_s1 + $0x58] sm:$0xff]  ;;  %v154_v21 = vld [vmem:[%s1804_s1 + $0x60] sm:$0xff] }
   0x6   :  { %821 = vmatprep.mubr.msk.f32.mxu0 %vm168_vm0, %v15_v9  ;;  %853 = vmatprep.mubr.msk.f32.mxu1 %vm168_vm0, %v79_v10  ;;  %v898_v17 = vpack.c.bf16 %v151_v16, %v150_v15  ;;  %v901_v20 = vpack.c.bf16 %v153_v19, %v152_v18  ;;  %v155_v22 = vld [vmem:[%s1804_s1 + $0x68] sm:$0xff]  ;;  %v156_v24 = vld [vmem:[%s1804_s1 + $0x70] sm:$0xff]  ;;  %v157_v25 = vld [vmem:[%s1804_s1 + $0x78] sm:$0xff] }
   0x7   :  { %v904_v23 = vpack.c.bf16 %v155_v22, %v154_v21  ;;  %v907_v26 = vpack.c.bf16 %v157_v25, %v156_v24  ;;  %v158_v27 = vld [vmem:[%s1804_s1 + $0x80] sm:$0xff]  ;;  %v159_v28 = vld [vmem:[%s1804_s1 + $0x88] sm:$0xff]  ;;  %v160_v31 = vld [vmem:[%s1804_s1 + $0x90] sm:$0x7] }
   0x8   :  { %890 = vmatpush1.bf16.msra.mxu0 %v889_v6  ;;  %923 = vmatpush1.bf16.msra.mxu1 %v889_v6  ;;  %v910_v29 = vpack.c.bf16 %v159_v28, %v158_v27  ;;  %v14_v32 = vld [vmem:[%s1805_s0] sm:$0xff]  ;;  %v17_v34 = vld [vmem:[%s1805_s0 + $0x18] sm:$0xff]  ;;  %v16_v36 = vld [vmem:[%s1805_s0 + $0x10] sm:$0xff] }
   0x9   :  { %891 = vmatprep.subr.bf16.mxu0 %v934_v0  ;;  %914 = vmatprep.subr.bf16.mxu1 %v934_v0  ;;  %v78_v33 = vld [vmem:[%s1805_s0 + $0x200] sm:$0xff]  ;;  %v81_v35 = vld [vmem:[%s1805_s0 + $0x218] sm:$0xff]  ;;  %v80_v37 = vld [vmem:[%s1805_s0 + $0x210] sm:$0xff] }
   0xa   :  { %v19_v38 = vld [vmem:[%s1805_s0 + $0x28] sm:$0xff]  ;;  %v18_v40 = vld [vmem:[%s1805_s0 + $0x20] sm:$0xff]  ;;  %v21_v42 = vld [vmem:[%s1805_s0 + $0x38] sm:$0xff] }
   0xb   :  { %v83_v39 = vld [vmem:[%s1805_s0 + $0x228] sm:$0xff]  ;;  %v82_v41 = vld [vmem:[%s1805_s0 + $0x220] sm:$0xff]  ;;  %v85_v43 = vld [vmem:[%s1805_s0 + $0x238] sm:$0xff] }
   0xc   :  { %893 = vmatpush1.bf16.msra.mxu0 %v892_v11  ;;  %924 = vmatpush1.bf16.msra.mxu1 %v892_v11  ;;  %v20_v44 = vld [vmem:[%s1805_s0 + $0x30] sm:$0xff]  ;;  %v23_v46 = vld [vmem:[%s1805_s0 + $0x48] sm:$0xff]  ;;  %v22_v48 = vld [vmem:[%s1805_s0 + $0x40] sm:$0xff] }
   0xd   :  { %894 = vmatprep.subr.bf16.mxu0 %v934_v0  ;;  %915 = vmatprep.subr.bf16.mxu1 %v934_v0  ;;  %v84_v45 = vld [vmem:[%s1805_s0 + $0x230] sm:$0xff]  ;;  %v87_v47 = vld [vmem:[%s1805_s0 + $0x248] sm:$0xff]  ;;  %v86_v49 = vld [vmem:[%s1805_s0 + $0x240] sm:$0xff] }
   0xe   :  { %v25_v50 = vld [vmem:[%s1805_s0 + $0x58] sm:$0xff]  ;;  %v24_v52 = vld [vmem:[%s1805_s0 + $0x50] sm:$0xff]  ;;  %v27_v54 = vld [vmem:[%s1805_s0 + $0x68] sm:$0xff] }
   0xf   :  { %v89_v51 = vld [vmem:[%s1805_s0 + $0x258] sm:$0xff]  ;;  %v88_v53 = vld [vmem:[%s1805_s0 + $0x250] sm:$0xff]  ;;  %v91_v55 = vld [vmem:[%s1805_s0 + $0x268] sm:$0xff] }
  0x10   :  { %896 = vmatpush1.bf16.msra.mxu0 %v895_v14  ;;  %925 = vmatpush1.bf16.msra.mxu1 %v895_v14  ;;  %v26_v56 = vld [vmem:[%s1805_s0 + $0x60] sm:$0xff]  ;;  %v29_v58 = vld [vmem:[%s1805_s0 + $0x78] sm:$0xff]  ;;  %v28_v60 = vld [vmem:[%s1805_s0 + $0x70] sm:$0xff] }
  0x11   :  { %897 = vmatprep.subr.bf16.mxu0 %v934_v0  ;;  %916 = vmatprep.subr.bf16.mxu1 %v934_v0  ;;  %v90_v57 = vld [vmem:[%s1805_s0 + $0x260] sm:$0xff]  ;;  %v93_v59 = vld [vmem:[%s1805_s0 + $0x278] sm:$0xff]  ;;  %v92_v61 = vld [vmem:[%s1805_s0 + $0x270] sm:$0xff] }
  0x12   :  { %v31_v62 = vld [vmem:[%s1805_s0 + $0x88] sm:$0xff]  ;;  %v94_v1 = vld [vmem:[%s1805_s0 + $0x280] sm:$0xff]  ;;  %v33_v2 = vld [vmem:[%s1805_s0 + $0x98] sm:$0xff] }
  0x13   :  { %v95_v63 = vld [vmem:[%s1805_s0 + $0x288] sm:$0xff]  ;;  %v97_v3 = vld [vmem:[%s1805_s0 + $0x298] sm:$0xff]  ;;  %v32_v4 = vld [vmem:[%s1805_s0 + $0x90] sm:$0xff] }
  0x14   :  { %899 = vmatpush1.bf16.msra.mxu0 %v898_v17  ;;  %926 = vmatpush1.bf16.msra.mxu1 %v898_v17  ;;  %v96_v5 = vld [vmem:[%s1805_s0 + $0x290] sm:$0xff]  ;;  %v35_v6 = vld [vmem:[%s1805_s0 + $0xa8] sm:$0xff]  ;;  %v34_v8 = vld [vmem:[%s1805_s0 + $0xa0] sm:$0xff] }
  0x15   :  { %900 = vmatprep.subr.bf16.mxu0 %v934_v0  ;;  %917 = vmatprep.subr.bf16.mxu1 %v934_v0  ;;  %v99_v7 = vld [vmem:[%s1805_s0 + $0x2a8] sm:$0xff]  ;;  %v98_v9 = vld [vmem:[%s1805_s0 + $0x2a0] sm:$0xff]  ;;  %v37_v10 = vld [vmem:[%s1805_s0 + $0xb8] sm:$0xff] }
  0x16   :  { %v101_v11 = vld [vmem:[%s1805_s0 + $0x2b8] sm:$0xff]  ;;  %v36_v12 = vld [vmem:[%s1805_s0 + $0xb0] sm:$0xff]  ;;  %v39_v14 = vld [vmem:[%s1805_s0 + $0xc8] sm:$0xff] }
  0x17   :  { %v100_v13 = vld [vmem:[%s1805_s0 + $0x2b0] sm:$0xff]  ;;  %v103_v15 = vld [vmem:[%s1805_s0 + $0x2c8] sm:$0xff]  ;;  %v38_v16 = vld [vmem:[%s1805_s0 + $0xc0] sm:$0xff] }
  0x18   :  { %902 = vmatpush1.bf16.msra.mxu0 %v901_v20  ;;  %927 = vmatpush1.bf16.msra.mxu1 %v901_v20  ;;  %v102_v17 = vld [vmem:[%s1805_s0 + $0x2c0] sm:$0xff]  ;;  %v41_v18 = vld [vmem:[%s1805_s0 + $0xd8] sm:$0xff]  ;;  %v40_v20 = vld [vmem:[%s1805_s0 + $0xd0] sm:$0xff] }
  0x19   :  { %903 = vmatprep.subr.bf16.mxu0 %v934_v0  ;;  %918 = vmatprep.subr.bf16.mxu1 %v934_v0  ;;  %v105_v19 = vld [vmem:[%s1805_s0 + $0x2d8] sm:$0xff]  ;;  %v104_v21 = vld [vmem:[%s1805_s0 + $0x2d0] sm:$0xff]  ;;  %v43_v22 = vld [vmem:[%s1805_s0 + $0xe8] sm:$0xff] }
  0x1a   :  { %v42_v24 = vld [vmem:[%s1805_s0 + $0xe0] sm:$0xff]  ;;  %v109_v27 = vld [vmem:[%s1805_s0 + $0x2f8] sm:$0xff]  ;;  %v44_v28 = vld [vmem:[%s1805_s0 + $0xf0] sm:$0xff] }
  0x1b   :  { %v106_v25 = vld [vmem:[%s1805_s0 + $0x2e0] sm:$0xff] }
  0x1c   :  { %905 = vmatpush1.bf16.msra.mxu0 %v904_v23  ;;  %928 = vmatpush1.bf16.msra.mxu1 %v904_v23  ;;  %v107_v23 = vld [vmem:[%s1805_s0 + $0x2e8] sm:$0xff] }
  0x1d   :  { %906 = vmatprep.subr.bf16.mxu0 %v934_v0  ;;  %919 = vmatprep.subr.bf16.mxu1 %v934_v0 }
  0x20   :  { %908 = vmatpush1.bf16.msra.mxu0 %v907_v26  ;;  %929 = vmatpush1.bf16.msra.mxu1 %v907_v26  ;;  %v45_v26 = vld [vmem:[%s1805_s0 + $0xf8] sm:$0xff] }
  0x21   :  { %909 = vmatprep.subr.bf16.mxu0 %v934_v0  ;;  %920 = vmatprep.subr.bf16.mxu1 %v934_v0  ;;  %v30_v0 = vld [vmem:[%s1805_s0 + $0x80] sm:$0xff] }
  0x24   :  { %911 = vmatpush1.bf16.msra.mxu0 %v910_v29  ;;  %930 = vmatpush1.bf16.msra.mxu1 %v910_v29  ;;  %v108_v29 = vld [vmem:[%s1805_s0 + $0x2f0] sm:$0xff] }
  0x25   :  { %401 = vmatprep.subr.mxu0 %v935_v30  ;;  %921 = vmatprep.subr.mxu1 %v935_v30  ;;  %v47_v30 = vld [vmem:[%s1805_s0 + $0x108] sm:$0xff] }
  0x28   :  { %820 = vmatpush1.msk.msra.mxu0 %vm361_vm1, %v160_v31  ;;  %931 = vmatpush1.msk.msra.mxu1 %vm361_vm1, %v160_v31  ;;  %v111_v31 = vld [vmem:[%s1805_s0 + $0x308] sm:$0xff] }
  0x29   :  { %430 = vmatmul.mubr.f32.vlgmr.msra.gmra.mrb[0].mxu0 %v14_v32  ;;  %590 = vmatmul.mubr.f32.vlgmr.msra.gmra.mrb[0].mxu1 %v78_v33  ;;  %v46_v32 = vld [vmem:[%s1805_s0 + $0x100] sm:$0xff] }
  0x2a   :  { %822 = vmatprep.mubr.msk.f32.mxu0 %vm168_vm0, %v17_v34  ;;  %854 = vmatprep.mubr.msk.f32.mxu1 %vm168_vm0, %v81_v35  ;;  %v110_v33 = vld [vmem:[%s1805_s0 + $0x300] sm:$0xff]  ;;  %v49_v34 = vld [vmem:[%s1805_s0 + $0x118] sm:$0xff] }
  0x2b   :  { %v113_v35 = vld [vmem:[%s1805_s0 + $0x318] sm:$0xff] }
  0x2d   :  { %435 = vmatmul.mubr.f32.gmra.mrb[2].mxu0 %v16_v36  ;;  %595 = vmatmul.mubr.f32.gmra.mrb[2].mxu1 %v80_v37  ;;  %v48_v36 = vld [vmem:[%s1805_s0 + $0x110] sm:$0xff] }
  0x2e   :  { %823 = vmatprep.mubr.msk.f32.mxu0 %vm168_vm0, %v19_v38  ;;  %855 = vmatprep.mubr.msk.f32.mxu1 %vm168_vm0, %v83_v39  ;;  %v112_v37 = vld [vmem:[%s1805_s0 + $0x310] sm:$0xff]  ;;  %v51_v38 = vld [vmem:[%s1805_s0 + $0x128] sm:$0xff] }
  0x2f   :  { %v115_v39 = vld [vmem:[%s1805_s0 + $0x328] sm:$0xff] }
  0x31   :  { %440 = vmatmul.mubr.f32.gmra.mrb[4].mxu0 %v18_v40  ;;  %600 = vmatmul.mubr.f32.gmra.mrb[4].mxu1 %v82_v41  ;;  %v50_v40 = vld [vmem:[%s1805_s0 + $0x120] sm:$0xff] }
  0x32   :  { %824 = vmatprep.mubr.msk.f32.mxu0 %vm168_vm0, %v21_v42  ;;  %856 = vmatprep.mubr.msk.f32.mxu1 %vm168_vm0, %v85_v43  ;;  %v114_v41 = vld [vmem:[%s1805_s0 + $0x320] sm:$0xff]  ;;  %v53_v42 = vld [vmem:[%s1805_s0 + $0x138] sm:$0xff] }
  0x33   :  { %v117_v43 = vld [vmem:[%s1805_s0 + $0x338] sm:$0xff] }
  0x35   :  { %445 = vmatmul.mubr.f32.gmra.mrb[6].mxu0 %v20_v44  ;;  %605 = vmatmul.mubr.f32.gmra.mrb[6].mxu1 %v84_v45  ;;  %v52_v44 = vld [vmem:[%s1805_s0 + $0x130] sm:$0xff] }
  0x36   :  { %825 = vmatprep.mubr.msk.f32.mxu0 %vm168_vm0, %v23_v46  ;;  %857 = vmatprep.mubr.msk.f32.mxu1 %vm168_vm0, %v87_v47  ;;  %v116_v45 = vld [vmem:[%s1805_s0 + $0x330] sm:$0xff]  ;;  %v55_v46 = vld [vmem:[%s1805_s0 + $0x148] sm:$0xff] }
  0x37   :  { %v119_v47 = vld [vmem:[%s1805_s0 + $0x348] sm:$0xff] }
  0x39   :  { %450 = vmatmul.mubr.f32.gmra.mrb[8].mxu0 %v22_v48  ;;  %610 = vmatmul.mubr.f32.gmra.mrb[8].mxu1 %v86_v49  ;;  %v54_v48 = vld [vmem:[%s1805_s0 + $0x140] sm:$0xff] }
  0x3a   :  { %826 = vmatprep.mubr.msk.f32.mxu0 %vm168_vm0, %v25_v50  ;;  %858 = vmatprep.mubr.msk.f32.mxu1 %vm168_vm0, %v89_v51  ;;  %v118_v49 = vld [vmem:[%s1805_s0 + $0x340] sm:$0xff]  ;;  %v57_v50 = vld [vmem:[%s1805_s0 + $0x158] sm:$0xff] }
  0x3b   :  { %v121_v51 = vld [vmem:[%s1805_s0 + $0x358] sm:$0xff] }
  0x3d   :  { %455 = vmatmul.mubr.f32.gmra.mrb[10].mxu0 %v24_v52  ;;  %615 = vmatmul.mubr.f32.gmra.mrb[10].mxu1 %v88_v53  ;;  %v56_v52 = vld [vmem:[%s1805_s0 + $0x150] sm:$0xff] }
  0x3e   :  { %827 = vmatprep.mubr.msk.f32.mxu0 %vm168_vm0, %v27_v54  ;;  %859 = vmatprep.mubr.msk.f32.mxu1 %vm168_vm0, %v91_v55  ;;  %v120_v53 = vld [vmem:[%s1805_s0 + $0x350] sm:$0xff]  ;;  %v59_v54 = vld [vmem:[%s1805_s0 + $0x168] sm:$0xff] }
  0x3f   :  { %v123_v55 = vld [vmem:[%s1805_s0 + $0x368] sm:$0xff] }
  0x41   :  { %460 = vmatmul.mubr.f32.gmra.mrb[12].mxu0 %v26_v56  ;;  %620 = vmatmul.mubr.f32.gmra.mrb[12].mxu1 %v90_v57  ;;  %v58_v56 = vld [vmem:[%s1805_s0 + $0x160] sm:$0xff] }
  0x42   :  { %828 = vmatprep.mubr.msk.f32.mxu0 %vm168_vm0, %v29_v58  ;;  %860 = vmatprep.mubr.msk.f32.mxu1 %vm168_vm0, %v93_v59  ;;  %v122_v57 = vld [vmem:[%s1805_s0 + $0x360] sm:$0xff]  ;;  %v61_v58 = vld [vmem:[%s1805_s0 + $0x178] sm:$0xff] }
  0x43   :  { %v125_v59 = vld [vmem:[%s1805_s0 + $0x378] sm:$0xff] }
  0x45   :  { %465 = vmatmul.mubr.f32.gmra.mrb[14].mxu0 %v28_v60  ;;  %625 = vmatmul.mubr.f32.gmra.mrb[14].mxu1 %v92_v61  ;;  %v60_v60 = vld [vmem:[%s1805_s0 + $0x170] sm:$0xff] }
  0x46   :  { %829 = vmatprep.mubr.msk.f32.mxu0 %vm168_vm0, %v31_v62  ;;  %861 = vmatprep.mubr.msk.f32.mxu1 %vm168_vm0, %v95_v63  ;;  %v124_v61 = vld [vmem:[%s1805_s0 + $0x370] sm:$0xff]  ;;  %v63_v62 = vld [vmem:[%s1805_s0 + $0x188] sm:$0xff] }
  0x47   :  { %v127_v63 = vld [vmem:[%s1805_s0 + $0x388] sm:$0xff] }
  0x49   :  { %470 = vmatmul.mubr.f32.gmra.mrb[16].mxu0 %v30_v0  ;;  %630 = vmatmul.mubr.f32.gmra.mrb[16].mxu1 %v94_v1  ;;  %v62_v0 = vld [vmem:[%s1805_s0 + $0x180] sm:$0xff] }
  0x4a   :  { %830 = vmatprep.mubr.msk.f32.mxu0 %vm168_vm0, %v33_v2  ;;  %862 = vmatprep.mubr.msk.f32.mxu1 %vm168_vm0, %v97_v3  ;;  %v126_v1 = vld [vmem:[%s1805_s0 + $0x380] sm:$0xff]  ;;  %v65_v2 = vld [vmem:[%s1805_s0 + $0x198] sm:$0xff] }
  0x4b   :  { %v129_v3 = vld [vmem:[%s1805_s0 + $0x398] sm:$0xff] }
  0x4d   :  { %475 = vmatmul.mubr.f32.gmra.mrb[18].mxu0 %v32_v4  ;;  %635 = vmatmul.mubr.f32.gmra.mrb[18].mxu1 %v96_v5  ;;  %v64_v4 = vld [vmem:[%s1805_s0 + $0x190] sm:$0xff] }
  0x4e   :  { %831 = vmatprep.mubr.msk.f32.mxu0 %vm168_vm0, %v35_v6  ;;  %863 = vmatprep.mubr.msk.f32.mxu1 %vm168_vm0, %v99_v7  ;;  %v128_v5 = vld [vmem:[%s1805_s0 + $0x390] sm:$0xff]  ;;  %v67_v6 = vld [vmem:[%s1805_s0 + $0x1a8] sm:$0xff] }
  0x4f   :  { %v131_v7 = vld [vmem:[%s1805_s0 + $0x3a8] sm:$0xff] }
  0x51   :  { %480 = vmatmul.mubr.f32.gmra.mrb[20].mxu0 %v34_v8  ;;  %640 = vmatmul.mubr.f32.gmra.mrb[20].mxu1 %v98_v9  ;;  %v66_v8 = vld [vmem:[%s1805_s0 + $0x1a0] sm:$0xff] }
  0x52   :  { %832 = vmatprep.mubr.msk.f32.mxu0 %vm168_vm0, %v37_v10  ;;  %864 = vmatprep.mubr.msk.f32.mxu1 %vm168_vm0, %v101_v11  ;;  %v130_v9 = vld [vmem:[%s1805_s0 + $0x3a0] sm:$0xff]  ;;  %v69_v10 = vld [vmem:[%s1805_s0 + $0x1b8] sm:$0xff] }
  0x53   :  { %v133_v11 = vld [vmem:[%s1805_s0 + $0x3b8] sm:$0xff] }
  0x55   :  { %485 = vmatmul.mubr.f32.gmra.mrb[22].mxu0 %v36_v12  ;;  %645 = vmatmul.mubr.f32.gmra.mrb[22].mxu1 %v100_v13  ;;  %v68_v12 = vld [vmem:[%s1805_s0 + $0x1b0] sm:$0xff] }
  0x56   :  { %833 = vmatprep.mubr.msk.f32.mxu0 %vm168_vm0, %v39_v14  ;;  %865 = vmatprep.mubr.msk.f32.mxu1 %vm168_vm0, %v103_v15  ;;  %v132_v13 = vld [vmem:[%s1805_s0 + $0x3b0] sm:$0xff]  ;;  %v71_v14 = vld [vmem:[%s1805_s0 + $0x1c8] sm:$0xff] }
  0x57   :  { %v135_v15 = vld [vmem:[%s1805_s0 + $0x3c8] sm:$0xff] }
  0x59   :  { %490 = vmatmul.mubr.f32.gmra.mrb[24].mxu0 %v38_v16  ;;  %650 = vmatmul.mubr.f32.gmra.mrb[24].mxu1 %v102_v17  ;;  %v70_v16 = vld [vmem:[%s1805_s0 + $0x1c0] sm:$0xff] }
  0x5a   :  { %834 = vmatprep.mubr.msk.f32.mxu0 %vm168_vm0, %v41_v18  ;;  %866 = vmatprep.mubr.msk.f32.mxu1 %vm168_vm0, %v105_v19  ;;  %v134_v17 = vld [vmem:[%s1805_s0 + $0x3c0] sm:$0xff]  ;;  %v73_v18 = vld [vmem:[%s1805_s0 + $0x1d8] sm:$0xff] }
  0x5b   :  { %v137_v19 = vld [vmem:[%s1805_s0 + $0x3d8] sm:$0xff] }
  0x5d   :  { %495 = vmatmul.mubr.f32.gmra.mrb[26].mxu0 %v40_v20  ;;  %655 = vmatmul.mubr.f32.gmra.mrb[26].mxu1 %v104_v21  ;;  %v72_v20 = vld [vmem:[%s1805_s0 + $0x1d0] sm:$0xff] }
  0x5e   :  { %835 = vmatprep.mubr.msk.f32.mxu0 %vm168_vm0, %v43_v22  ;;  %867 = vmatprep.mubr.msk.f32.mxu1 %vm168_vm0, %v107_v23  ;;  %v136_v21 = vld [vmem:[%s1805_s0 + $0x3d0] sm:$0xff]  ;;  %v75_v22 = vld [vmem:[%s1805_s0 + $0x1e8] sm:$0xff] }
  0x5f   :  { %v139_v23 = vld [vmem:[%s1805_s0 + $0x3e8] sm:$0xff] }
  0x61   :  { %500 = vmatmul.mubr.f32.gmra.mrb[28].mxu0 %v42_v24  ;;  %660 = vmatmul.mubr.f32.gmra.mrb[28].mxu1 %v106_v25  ;;  %v74_v24 = vld [vmem:[%s1805_s0 + $0x1e0] sm:$0xff] }
  0x62   :  { %836 = vmatprep.mubr.msk.f32.mxu0 %vm168_vm0, %v45_v26  ;;  %868 = vmatprep.mubr.msk.f32.mxu1 %vm168_vm0, %v109_v27  ;;  %v138_v25 = vld [vmem:[%s1805_s0 + $0x3e0] sm:$0xff]  ;;  %v77_v26 = vld [vmem:[%s1805_s0 + $0x1f8] sm:$0xff] }
  0x63   :  { %v141_v27 = vld [vmem:[%s1805_s0 + $0x3f8] sm:$0xff] }
  0x65   :  { %505 = vmatmul.mubr.f32.gmra.mrb[30].mxu0 %v44_v28  ;;  %665 = vmatmul.mubr.f32.gmra.mrb[30].mxu1 %v108_v29  ;;  %v76_v28 = vld [vmem:[%s1805_s0 + $0x1f0] sm:$0xff] }
  0x66   :  { %837 = vmatprep.mubr.msk.f32.mxu0 %vm168_vm0, %v47_v30  ;;  %869 = vmatprep.mubr.msk.f32.mxu1 %vm168_vm0, %v111_v31  ;;  %v140_v29 = vld [vmem:[%s1805_s0 + $0x3f0] sm:$0xff]  ;;  %v1482_v30 = vld [vmem:[%s1806_s2] ss:$0 sm:$0xff] }
  0x69   :  { %510 = vmatmul.mubr.f32.gmra.mrb[32].mxu0 %v46_v32  ;;  %670 = vmatmul.mubr.f32.gmra.mrb[32].mxu1 %v110_v33 }
  0x6a   :  { %838 = vmatprep.mubr.msk.f32.mxu0 %vm168_vm0, %v49_v34  ;;  %870 = vmatprep.mubr.msk.f32.mxu1 %vm168_vm0, %v113_v35 }
  0x6d   :  { %515 = vmatmul.mubr.f32.gmra.mrb[34].mxu0 %v48_v36  ;;  %675 = vmatmul.mubr.f32.gmra.mrb[34].mxu1 %v112_v37 }
  0x6e   :  { %839 = vmatprep.mubr.msk.f32.mxu0 %vm168_vm0, %v51_v38  ;;  %871 = vmatprep.mubr.msk.f32.mxu1 %vm168_vm0, %v115_v39 }
  0x71   :  { %520 = vmatmul.mubr.f32.gmra.mrb[36].mxu0 %v50_v40  ;;  %680 = vmatmul.mubr.f32.gmra.mrb[36].mxu1 %v114_v41 }
  0x72   :  { %840 = vmatprep.mubr.msk.f32.mxu0 %vm168_vm0, %v53_v42  ;;  %872 = vmatprep.mubr.msk.f32.mxu1 %vm168_vm0, %v117_v43 }
  0x75   :  { %525 = vmatmul.mubr.f32.gmra.mrb[38].mxu0 %v52_v44  ;;  %685 = vmatmul.mubr.f32.gmra.mrb[38].mxu1 %v116_v45 }
  0x76   :  { %841 = vmatprep.mubr.msk.f32.mxu0 %vm168_vm0, %v55_v46  ;;  %873 = vmatprep.mubr.msk.f32.mxu1 %vm168_vm0, %v119_v47 }
  0x79   :  { %530 = vmatmul.mubr.f32.gmra.mrb[40].mxu0 %v54_v48  ;;  %690 = vmatmul.mubr.f32.gmra.mrb[40].mxu1 %v118_v49 }
  0x7a   :  { %842 = vmatprep.mubr.msk.f32.mxu0 %vm168_vm0, %v57_v50  ;;  %874 = vmatprep.mubr.msk.f32.mxu1 %vm168_vm0, %v121_v51 }
  0x7d   :  { %535 = vmatmul.mubr.f32.gmra.mrb[42].mxu0 %v56_v52  ;;  %695 = vmatmul.mubr.f32.gmra.mrb[42].mxu1 %v120_v53 }
  0x7e   :  { %843 = vmatprep.mubr.msk.f32.mxu0 %vm168_vm0, %v59_v54  ;;  %875 = vmatprep.mubr.msk.f32.mxu1 %vm168_vm0, %v123_v55 }
  0x81   :  { %540 = vmatmul.mubr.f32.gmra.mrb[44].mxu0 %v58_v56  ;;  %700 = vmatmul.mubr.f32.gmra.mrb[44].mxu1 %v122_v57 }
  0x82   :  { %844 = vmatprep.mubr.msk.f32.mxu0 %vm168_vm0, %v61_v58  ;;  %876 = vmatprep.mubr.msk.f32.mxu1 %vm168_vm0, %v125_v59 }
  0x85   :  { %545 = vmatmul.mubr.f32.gmra.mrb[46].mxu0 %v60_v60  ;;  %705 = vmatmul.mubr.f32.gmra.mrb[46].mxu1 %v124_v61 }
  0x86   :  { %845 = vmatprep.mubr.msk.f32.mxu0 %vm168_vm0, %v63_v62  ;;  %877 = vmatprep.mubr.msk.f32.mxu1 %vm168_vm0, %v127_v63 }
  0x89   :  { %550 = vmatmul.mubr.f32.gmra.mrb[48].mxu0 %v62_v0  ;;  %710 = vmatmul.mubr.f32.gmra.mrb[48].mxu1 %v126_v1 }
  0x8a   :  { %846 = vmatprep.mubr.msk.f32.mxu0 %vm168_vm0, %v65_v2  ;;  %878 = vmatprep.mubr.msk.f32.mxu1 %vm168_vm0, %v129_v3 }
  0x8d   :  { %555 = vmatmul.mubr.f32.gmra.mrb[50].mxu0 %v64_v4  ;;  %715 = vmatmul.mubr.f32.gmra.mrb[50].mxu1 %v128_v5 }
  0x8e   :  { %847 = vmatprep.mubr.msk.f32.mxu0 %vm168_vm0, %v67_v6  ;;  %879 = vmatprep.mubr.msk.f32.mxu1 %vm168_vm0, %v131_v7 }
  0x91   :  { %560 = vmatmul.mubr.f32.gmra.mrb[52].mxu0 %v66_v8  ;;  %720 = vmatmul.mubr.f32.gmra.mrb[52].mxu1 %v130_v9 }
  0x92   :  { %848 = vmatprep.mubr.msk.f32.mxu0 %vm168_vm0, %v69_v10  ;;  %880 = vmatprep.mubr.msk.f32.mxu1 %vm168_vm0, %v133_v11 }
  0x95   :  { %565 = vmatmul.mubr.f32.gmra.mrb[54].mxu0 %v68_v12  ;;  %725 = vmatmul.mubr.f32.gmra.mrb[54].mxu1 %v132_v13 }
  0x96   :  { %849 = vmatprep.mubr.msk.f32.mxu0 %vm168_vm0, %v71_v14  ;;  %881 = vmatprep.mubr.msk.f32.mxu1 %vm168_vm0, %v135_v15 }
  0x99   :  { %570 = vmatmul.mubr.f32.gmra.mrb[56].mxu0 %v70_v16  ;;  %730 = vmatmul.mubr.f32.gmra.mrb[56].mxu1 %v134_v17 }
  0x9a   :  { %850 = vmatprep.mubr.msk.f32.mxu0 %vm168_vm0, %v73_v18  ;;  %882 = vmatprep.mubr.msk.f32.mxu1 %vm168_vm0, %v137_v19 }
  0x9d   :  { %575 = vmatmul.mubr.f32.gmra.mrb[58].mxu0 %v72_v20  ;;  %735 = vmatmul.mubr.f32.gmra.mrb[58].mxu1 %v136_v21 }
  0x9e   :  { %851 = vmatprep.mubr.msk.f32.mxu0 %vm168_vm0, %v75_v22  ;;  %883 = vmatprep.mubr.msk.f32.mxu1 %vm168_vm0, %v139_v23 }
  0xa1   :  { %580 = vmatmul.mubr.f32.gmra.mrb[60].mxu0 %v74_v24  ;;  %740 = vmatmul.mubr.f32.gmra.mrb[60].mxu1 %v138_v25 }
  0xa2   :  { %852 = vmatprep.mubr.msk.f32.mxu0 %vm168_vm0, %v77_v26  ;;  %884 = vmatprep.mubr.msk.f32.mxu1 %vm168_vm0, %v141_v27 }
  0xa5   :  { %585 = vmatmul.mubr.f32.gmra.mrb[62].mxu0 %v76_v28  ;;  %745 = vmatmul.mubr.f32.gmra.mrb[62].mxu1 %v140_v29 }
  0xfc   :  { %v431_v31 = vpop.f32.mrb[0].mxu0  ;;  %v591_v32 = vpop.f32.mrb[0].mxu1 }
  0xfd   :  { %v432_v33 = vadd.f32 %v1482_v30, %v431_v31  ;;  %v592_v34 = vadd.f32 %v1482_v30, %v591_v32  ;;  %v433_v35 = vpop.f32.mrb[1].mxu0  ;;  %v593_v36 = vpop.f32.mrb[1].mxu1 }
  0xff   :  { %751 = vst.msk [vmem:[%s1807_s3] sm:$0xff] %vm750_vm2, %v432_v33  ;;  %783 = vst.msk [vmem:[%s1807_s3 + $0x100] sm:$0xff] %vm750_vm2, %v592_v34 }
 0x100   :  { %v436_v37 = vpop.f32.mrb[2].mxu0  ;;  %v596_v38 = vpop.f32.mrb[2].mxu1 }
 0x101   :  { %v437_v39 = vadd.f32 %v1482_v30, %v436_v37  ;;  %v597_v40 = vadd.f32 %v1482_v30, %v596_v38  ;;  %v438_v41 = vpop.f32.mrb[3].mxu0  ;;  %v598_v42 = vpop.f32.mrb[3].mxu1 }
 0x103   :  { %752 = vst.msk [vmem:[%s1807_s3 + $0x8] sm:$0xff] %vm750_vm2, %v437_v39  ;;  %784 = vst.msk [vmem:[%s1807_s3 + $0x108] sm:$0xff] %vm750_vm2, %v597_v40 }
 0x104   :  { %v441_v43 = vpop.f32.mrb[4].mxu0  ;;  %v601_v44 = vpop.f32.mrb[4].mxu1 }
 0x105   :  { %v442_v45 = vadd.f32 %v1482_v30, %v441_v43  ;;  %v602_v46 = vadd.f32 %v1482_v30, %v601_v44  ;;  %v443_v47 = vpop.f32.mrb[5].mxu0  ;;  %v603_v48 = vpop.f32.mrb[5].mxu1 }
 0x107   :  { %753 = vst.msk [vmem:[%s1807_s3 + $0x10] sm:$0xff] %vm750_vm2, %v442_v45  ;;  %785 = vst.msk [vmem:[%s1807_s3 + $0x110] sm:$0xff] %vm750_vm2, %v602_v46 }
 0x108   :  { %v446_v49 = vpop.f32.mrb[6].mxu0  ;;  %v606_v50 = vpop.f32.mrb[6].mxu1 }
 0x109   :  { %v447_v51 = vadd.f32 %v1482_v30, %v446_v49  ;;  %v607_v52 = vadd.f32 %v1482_v30, %v606_v50  ;;  %v448_v53 = vpop.f32.mrb[7].mxu0  ;;  %v608_v54 = vpop.f32.mrb[7].mxu1 }
 0x10b   :  { %754 = vst.msk [vmem:[%s1807_s3 + $0x18] sm:$0xff] %vm750_vm2, %v447_v51  ;;  %786 = vst.msk [vmem:[%s1807_s3 + $0x118] sm:$0xff] %vm750_vm2, %v607_v52 }
 0x10c   :  { %v451_v55 = vpop.f32.mrb[8].mxu0  ;;  %v611_v56 = vpop.f32.mrb[8].mxu1 }
 0x10d   :  { %v452_v57 = vadd.f32 %v1482_v30, %v451_v55  ;;  %v612_v58 = vadd.f32 %v1482_v30, %v611_v56  ;;  %v453_v59 = vpop.f32.mrb[9].mxu0  ;;  %v613_v60 = vpop.f32.mrb[9].mxu1 }
 0x10f   :  { %755 = vst.msk [vmem:[%s1807_s3 + $0x20] sm:$0xff] %vm750_vm2, %v452_v57  ;;  %787 = vst.msk [vmem:[%s1807_s3 + $0x120] sm:$0xff] %vm750_vm2, %v612_v58 }
 0x110   :  { %v456_v61 = vpop.f32.mrb[10].mxu0  ;;  %v616_v62 = vpop.f32.mrb[10].mxu1 }
 0x111   :  { %v457_v63 = vadd.f32 %v1482_v30, %v456_v61  ;;  %v617_v0 = vadd.f32 %v1482_v30, %v616_v62  ;;  %v458_v1 = vpop.f32.mrb[11].mxu0  ;;  %v618_v2 = vpop.f32.mrb[11].mxu1 }
 0x113   :  { %756 = vst.msk [vmem:[%s1807_s3 + $0x28] sm:$0xff] %vm750_vm2, %v457_v63  ;;  %788 = vst.msk [vmem:[%s1807_s3 + $0x128] sm:$0xff] %vm750_vm2, %v617_v0 }
 0x114   :  { %v461_v3 = vpop.f32.mrb[12].mxu0  ;;  %v621_v4 = vpop.f32.mrb[12].mxu1 }
 0x115   :  { %v462_v5 = vadd.f32 %v1482_v30, %v461_v3  ;;  %v622_v6 = vadd.f32 %v1482_v30, %v621_v4  ;;  %v463_v7 = vpop.f32.mrb[13].mxu0  ;;  %v623_v8 = vpop.f32.mrb[13].mxu1 }
 0x117   :  { %757 = vst.msk [vmem:[%s1807_s3 + $0x30] sm:$0xff] %vm750_vm2, %v462_v5  ;;  %789 = vst.msk [vmem:[%s1807_s3 + $0x130] sm:$0xff] %vm750_vm2, %v622_v6 }
 0x118   :  { %v466_v9 = vpop.f32.mrb[14].mxu0  ;;  %v626_v10 = vpop.f32.mrb[14].mxu1 }
 0x119   :  { %v467_v11 = vadd.f32 %v1482_v30, %v466_v9  ;;  %v627_v12 = vadd.f32 %v1482_v30, %v626_v10  ;;  %v468_v13 = vpop.f32.mrb[15].mxu0  ;;  %v628_v14 = vpop.f32.mrb[15].mxu1 }
 0x11b   :  { %758 = vst.msk [vmem:[%s1807_s3 + $0x38] sm:$0xff] %vm750_vm2, %v467_v11  ;;  %790 = vst.msk [vmem:[%s1807_s3 + $0x138] sm:$0xff] %vm750_vm2, %v627_v12 }
 0x11c   :  { %v471_v15 = vpop.f32.mrb[16].mxu0  ;;  %v631_v16 = vpop.f32.mrb[16].mxu1 }
 0x11d   :  { %v472_v17 = vadd.f32 %v1482_v30, %v471_v15  ;;  %v632_v18 = vadd.f32 %v1482_v30, %v631_v16  ;;  %v473_v19 = vpop.f32.mrb[17].mxu0  ;;  %v633_v20 = vpop.f32.mrb[17].mxu1 }
 0x11f   :  { %759 = vst.msk [vmem:[%s1807_s3 + $0x40] sm:$0xff] %vm750_vm2, %v472_v17  ;;  %791 = vst.msk [vmem:[%s1807_s3 + $0x140] sm:$0xff] %vm750_vm2, %v632_v18 }
 0x120   :  { %v476_v21 = vpop.f32.mrb[18].mxu0  ;;  %v636_v22 = vpop.f32.mrb[18].mxu1 }
 0x121   :  { %v477_v23 = vadd.f32 %v1482_v30, %v476_v21  ;;  %v637_v24 = vadd.f32 %v1482_v30, %v636_v22  ;;  %v478_v25 = vpop.f32.mrb[19].mxu0  ;;  %v638_v26 = vpop.f32.mrb[19].mxu1 }
 0x123   :  { %760 = vst.msk [vmem:[%s1807_s3 + $0x48] sm:$0xff] %vm750_vm2, %v477_v23  ;;  %792 = vst.msk [vmem:[%s1807_s3 + $0x148] sm:$0xff] %vm750_vm2, %v637_v24 }
 0x124   :  { %v481_v27 = vpop.f32.mrb[20].mxu0  ;;  %v641_v28 = vpop.f32.mrb[20].mxu1 }
 0x125   :  { %v482_v29 = vadd.f32 %v1482_v30, %v481_v27  ;;  %v642_v31 = vadd.f32 %v1482_v30, %v641_v28  ;;  %v483_v32 = vpop.f32.mrb[21].mxu0  ;;  %v643_v33 = vpop.f32.mrb[21].mxu1 }
 0x127   :  { %761 = vst.msk [vmem:[%s1807_s3 + $0x50] sm:$0xff] %vm750_vm2, %v482_v29  ;;  %793 = vst.msk [vmem:[%s1807_s3 + $0x150] sm:$0xff] %vm750_vm2, %v642_v31 }
 0x128   :  { %v486_v34 = vpop.f32.mrb[22].mxu0  ;;  %v646_v35 = vpop.f32.mrb[22].mxu1 }
 0x129   :  { %v487_v36 = vadd.f32 %v1482_v30, %v486_v34  ;;  %v647_v37 = vadd.f32 %v1482_v30, %v646_v35  ;;  %v488_v38 = vpop.f32.mrb[23].mxu0  ;;  %v648_v39 = vpop.f32.mrb[23].mxu1 }
 0x12b   :  { %762 = vst.msk [vmem:[%s1807_s3 + $0x58] sm:$0xff] %vm750_vm2, %v487_v36  ;;  %794 = vst.msk [vmem:[%s1807_s3 + $0x158] sm:$0xff] %vm750_vm2, %v647_v37 }
 0x12c   :  { %v491_v40 = vpop.f32.mrb[24].mxu0  ;;  %v651_v41 = vpop.f32.mrb[24].mxu1 }
 0x12d   :  { %v492_v42 = vadd.f32 %v1482_v30, %v491_v40  ;;  %v652_v43 = vadd.f32 %v1482_v30, %v651_v41  ;;  %v493_v44 = vpop.f32.mrb[25].mxu0  ;;  %v653_v45 = vpop.f32.mrb[25].mxu1 }
 0x12f   :  { %763 = vst.msk [vmem:[%s1807_s3 + $0x60] sm:$0xff] %vm750_vm2, %v492_v42  ;;  %795 = vst.msk [vmem:[%s1807_s3 + $0x160] sm:$0xff] %vm750_vm2, %v652_v43 }
 0x130   :  { %v496_v46 = vpop.f32.mrb[26].mxu0  ;;  %v656_v47 = vpop.f32.mrb[26].mxu1 }
 0x131   :  { %v497_v48 = vadd.f32 %v1482_v30, %v496_v46  ;;  %v657_v49 = vadd.f32 %v1482_v30, %v656_v47  ;;  %v498_v50 = vpop.f32.mrb[27].mxu0  ;;  %v658_v51 = vpop.f32.mrb[27].mxu1 }
 0x133   :  { %764 = vst.msk [vmem:[%s1807_s3 + $0x68] sm:$0xff] %vm750_vm2, %v497_v48  ;;  %796 = vst.msk [vmem:[%s1807_s3 + $0x168] sm:$0xff] %vm750_vm2, %v657_v49 }
 0x134   :  { %v501_v52 = vpop.f32.mrb[28].mxu0  ;;  %v661_v53 = vpop.f32.mrb[28].mxu1 }
 0x135   :  { %v502_v54 = vadd.f32 %v1482_v30, %v501_v52  ;;  %v662_v55 = vadd.f32 %v1482_v30, %v661_v53  ;;  %v503_v56 = vpop.f32.mrb[29].mxu0  ;;  %v663_v57 = vpop.f32.mrb[29].mxu1 }
 0x137   :  { %765 = vst.msk [vmem:[%s1807_s3 + $0x70] sm:$0xff] %vm750_vm2, %v502_v54  ;;  %797 = vst.msk [vmem:[%s1807_s3 + $0x170] sm:$0xff] %vm750_vm2, %v662_v55 }
 0x138   :  { %v506_v58 = vpop.f32.mrb[30].mxu0  ;;  %v666_v59 = vpop.f32.mrb[30].mxu1 }
 0x139   :  { %v507_v60 = vadd.f32 %v1482_v30, %v506_v58  ;;  %v667_v61 = vadd.f32 %v1482_v30, %v666_v59  ;;  %v508_v62 = vpop.f32.mrb[31].mxu0  ;;  %v668_v63 = vpop.f32.mrb[31].mxu1 }
 0x13b   :  { %766 = vst.msk [vmem:[%s1807_s3 + $0x78] sm:$0xff] %vm750_vm2, %v507_v60  ;;  %798 = vst.msk [vmem:[%s1807_s3 + $0x178] sm:$0xff] %vm750_vm2, %v667_v61 }
 0x13c   :  { %v511_v0 = vpop.f32.mrb[32].mxu0  ;;  %v671_v1 = vpop.f32.mrb[32].mxu1 }
 0x13d   :  { %v512_v2 = vadd.f32 %v1482_v30, %v511_v0  ;;  %v672_v3 = vadd.f32 %v1482_v30, %v671_v1  ;;  %v513_v4 = vpop.f32.mrb[33].mxu0  ;;  %v673_v5 = vpop.f32.mrb[33].mxu1 }
 0x13f   :  { %767 = vst.msk [vmem:[%s1807_s3 + $0x80] sm:$0xff] %vm750_vm2, %v512_v2  ;;  %799 = vst.msk [vmem:[%s1807_s3 + $0x180] sm:$0xff] %vm750_vm2, %v672_v3 }
 0x140   :  { %v516_v6 = vpop.f32.mrb[34].mxu0  ;;  %v676_v7 = vpop.f32.mrb[34].mxu1 }
 0x141   :  { %v517_v8 = vadd.f32 %v1482_v30, %v516_v6  ;;  %v677_v9 = vadd.f32 %v1482_v30, %v676_v7  ;;  %v518_v10 = vpop.f32.mrb[35].mxu0  ;;  %v678_v11 = vpop.f32.mrb[35].mxu1 }
 0x143   :  { %768 = vst.msk [vmem:[%s1807_s3 + $0x88] sm:$0xff] %vm750_vm2, %v517_v8  ;;  %800 = vst.msk [vmem:[%s1807_s3 + $0x188] sm:$0xff] %vm750_vm2, %v677_v9 }
 0x144   :  { %v521_v12 = vpop.f32.mrb[36].mxu0  ;;  %v681_v13 = vpop.f32.mrb[36].mxu1 }
 0x145   :  { %v522_v14 = vadd.f32 %v1482_v30, %v521_v12  ;;  %v682_v15 = vadd.f32 %v1482_v30, %v681_v13  ;;  %v523_v16 = vpop.f32.mrb[37].mxu0  ;;  %v683_v17 = vpop.f32.mrb[37].mxu1 }
 0x147   :  { %769 = vst.msk [vmem:[%s1807_s3 + $0x90] sm:$0xff] %vm750_vm2, %v522_v14  ;;  %801 = vst.msk [vmem:[%s1807_s3 + $0x190] sm:$0xff] %vm750_vm2, %v682_v15 }
 0x148   :  { %v526_v18 = vpop.f32.mrb[38].mxu0  ;;  %v686_v19 = vpop.f32.mrb[38].mxu1 }
 0x149   :  { %v527_v20 = vadd.f32 %v1482_v30, %v526_v18  ;;  %v687_v21 = vadd.f32 %v1482_v30, %v686_v19  ;;  %v528_v22 = vpop.f32.mrb[39].mxu0  ;;  %v688_v23 = vpop.f32.mrb[39].mxu1 }
 0x14b   :  { %770 = vst.msk [vmem:[%s1807_s3 + $0x98] sm:$0xff] %vm750_vm2, %v527_v20  ;;  %802 = vst.msk [vmem:[%s1807_s3 + $0x198] sm:$0xff] %vm750_vm2, %v687_v21 }
 0x14c   :  { %v531_v24 = vpop.f32.mrb[40].mxu0  ;;  %v691_v25 = vpop.f32.mrb[40].mxu1 }
 0x14d   :  { %v532_v26 = vadd.f32 %v1482_v30, %v531_v24  ;;  %v692_v27 = vadd.f32 %v1482_v30, %v691_v25  ;;  %v533_v28 = vpop.f32.mrb[41].mxu0  ;;  %v693_v29 = vpop.f32.mrb[41].mxu1 }
 0x14f   :  { %771 = vst.msk [vmem:[%s1807_s3 + $0xa0] sm:$0xff] %vm750_vm2, %v532_v26  ;;  %803 = vst.msk [vmem:[%s1807_s3 + $0x1a0] sm:$0xff] %vm750_vm2, %v692_v27 }
 0x150   :  { %v536_v31 = vpop.f32.mrb[42].mxu0  ;;  %v696_v32 = vpop.f32.mrb[42].mxu1 }
 0x151   :  { %v537_v33 = vadd.f32 %v1482_v30, %v536_v31  ;;  %v697_v34 = vadd.f32 %v1482_v30, %v696_v32  ;;  %v538_v35 = vpop.f32.mrb[43].mxu0  ;;  %v698_v36 = vpop.f32.mrb[43].mxu1 }
 0x153   :  { %772 = vst.msk [vmem:[%s1807_s3 + $0xa8] sm:$0xff] %vm750_vm2, %v537_v33  ;;  %804 = vst.msk [vmem:[%s1807_s3 + $0x1a8] sm:$0xff] %vm750_vm2, %v697_v34 }
 0x154   :  { %v541_v37 = vpop.f32.mrb[44].mxu0  ;;  %v701_v38 = vpop.f32.mrb[44].mxu1 }
 0x155   :  { %v542_v39 = vadd.f32 %v1482_v30, %v541_v37  ;;  %v702_v40 = vadd.f32 %v1482_v30, %v701_v38  ;;  %v543_v41 = vpop.f32.mrb[45].mxu0  ;;  %v703_v42 = vpop.f32.mrb[45].mxu1 }
 0x157   :  { %773 = vst.msk [vmem:[%s1807_s3 + $0xb0] sm:$0xff] %vm750_vm2, %v542_v39  ;;  %805 = vst.msk [vmem:[%s1807_s3 + $0x1b0] sm:$0xff] %vm750_vm2, %v702_v40 }
 0x158   :  { %v546_v43 = vpop.f32.mrb[46].mxu0  ;;  %v706_v44 = vpop.f32.mrb[46].mxu1 }
 0x159   :  { %v547_v45 = vadd.f32 %v1482_v30, %v546_v43  ;;  %v707_v46 = vadd.f32 %v1482_v30, %v706_v44  ;;  %v548_v47 = vpop.f32.mrb[47].mxu0  ;;  %v708_v48 = vpop.f32.mrb[47].mxu1 }
 0x15b   :  { %774 = vst.msk [vmem:[%s1807_s3 + $0xb8] sm:$0xff] %vm750_vm2, %v547_v45  ;;  %806 = vst.msk [vmem:[%s1807_s3 + $0x1b8] sm:$0xff] %vm750_vm2, %v707_v46 }
 0x15c   :  { %v551_v49 = vpop.f32.mrb[48].mxu0  ;;  %v711_v50 = vpop.f32.mrb[48].mxu1 }
 0x15d   :  { %v552_v51 = vadd.f32 %v1482_v30, %v551_v49  ;;  %v712_v52 = vadd.f32 %v1482_v30, %v711_v50  ;;  %v553_v53 = vpop.f32.mrb[49].mxu0  ;;  %v713_v54 = vpop.f32.mrb[49].mxu1 }
 0x15f   :  { %775 = vst.msk [vmem:[%s1807_s3 + $0xc0] sm:$0xff] %vm750_vm2, %v552_v51  ;;  %807 = vst.msk [vmem:[%s1807_s3 + $0x1c0] sm:$0xff] %vm750_vm2, %v712_v52 }
 0x160   :  { %v556_v55 = vpop.f32.mrb[50].mxu0  ;;  %v716_v56 = vpop.f32.mrb[50].mxu1 }
 0x161   :  { %v557_v57 = vadd.f32 %v1482_v30, %v556_v55  ;;  %v717_v58 = vadd.f32 %v1482_v30, %v716_v56  ;;  %v558_v59 = vpop.f32.mrb[51].mxu0  ;;  %v718_v60 = vpop.f32.mrb[51].mxu1 }
 0x163   :  { %776 = vst.msk [vmem:[%s1807_s3 + $0xc8] sm:$0xff] %vm750_vm2, %v557_v57  ;;  %808 = vst.msk [vmem:[%s1807_s3 + $0x1c8] sm:$0xff] %vm750_vm2, %v717_v58 }
 0x164   :  { %v561_v61 = vpop.f32.mrb[52].mxu0  ;;  %v721_v62 = vpop.f32.mrb[52].mxu1 }
 0x165   :  { %v562_v63 = vadd.f32 %v1482_v30, %v561_v61  ;;  %v722_v0 = vadd.f32 %v1482_v30, %v721_v62  ;;  %v563_v1 = vpop.f32.mrb[53].mxu0  ;;  %v723_v2 = vpop.f32.mrb[53].mxu1 }
 0x167   :  { %777 = vst.msk [vmem:[%s1807_s3 + $0xd0] sm:$0xff] %vm750_vm2, %v562_v63  ;;  %809 = vst.msk [vmem:[%s1807_s3 + $0x1d0] sm:$0xff] %vm750_vm2, %v722_v0 }
 0x168   :  { %v566_v3 = vpop.f32.mrb[54].mxu0  ;;  %v726_v4 = vpop.f32.mrb[54].mxu1 }
 0x169   :  { %v567_v5 = vadd.f32 %v1482_v30, %v566_v3  ;;  %v727_v6 = vadd.f32 %v1482_v30, %v726_v4  ;;  %v568_v7 = vpop.f32.mrb[55].mxu0  ;;  %v728_v8 = vpop.f32.mrb[55].mxu1 }
 0x16b   :  { %778 = vst.msk [vmem:[%s1807_s3 + $0xd8] sm:$0xff] %vm750_vm2, %v567_v5  ;;  %810 = vst.msk [vmem:[%s1807_s3 + $0x1d8] sm:$0xff] %vm750_vm2, %v727_v6 }
 0x16c   :  { %v571_v9 = vpop.f32.mrb[56].mxu0  ;;  %v731_v10 = vpop.f32.mrb[56].mxu1 }
 0x16d   :  { %v572_v11 = vadd.f32 %v1482_v30, %v571_v9  ;;  %v732_v12 = vadd.f32 %v1482_v30, %v731_v10  ;;  %v573_v13 = vpop.f32.mrb[57].mxu0  ;;  %v733_v14 = vpop.f32.mrb[57].mxu1 }
 0x16f   :  { %779 = vst.msk [vmem:[%s1807_s3 + $0xe0] sm:$0xff] %vm750_vm2, %v572_v11  ;;  %811 = vst.msk [vmem:[%s1807_s3 + $0x1e0] sm:$0xff] %vm750_vm2, %v732_v12 }
 0x170   :  { %v576_v15 = vpop.f32.mrb[58].mxu0  ;;  %v736_v16 = vpop.f32.mrb[58].mxu1 }
 0x171   :  { %v577_v17 = vadd.f32 %v1482_v30, %v576_v15  ;;  %v737_v18 = vadd.f32 %v1482_v30, %v736_v16  ;;  %v578_v19 = vpop.f32.mrb[59].mxu0  ;;  %v738_v20 = vpop.f32.mrb[59].mxu1 }
 0x173   :  { %780 = vst.msk [vmem:[%s1807_s3 + $0xe8] sm:$0xff] %vm750_vm2, %v577_v17  ;;  %812 = vst.msk [vmem:[%s1807_s3 + $0x1e8] sm:$0xff] %vm750_vm2, %v737_v18 }
 0x174   :  { %v581_v21 = vpop.f32.mrb[60].mxu0  ;;  %v741_v22 = vpop.f32.mrb[60].mxu1 }
 0x175   :  { %v582_v23 = vadd.f32 %v1482_v30, %v581_v21  ;;  %v742_v24 = vadd.f32 %v1482_v30, %v741_v22  ;;  %v583_v25 = vpop.f32.mrb[61].mxu0  ;;  %v743_v26 = vpop.f32.mrb[61].mxu1 }
 0x177   :  { %781 = vst.msk [vmem:[%s1807_s3 + $0xf0] sm:$0xff] %vm750_vm2, %v582_v23  ;;  %813 = vst.msk [vmem:[%s1807_s3 + $0x1f0] sm:$0xff] %vm750_vm2, %v742_v24 }
 0x178   :  { %v586_v27 = vpop.f32.mrb[62].mxu0  ;;  %v746_v28 = vpop.f32.mrb[62].mxu1 }
 0x179   :  { %v587_v29 = vadd.f32 %v1482_v30, %v586_v27  ;;  %v747_v31 = vadd.f32 %v1482_v30, %v746_v28  ;;  %v588_v32 = vpop.f32.mrb[63].mxu0  ;;  %v748_v33 = vpop.f32.mrb[63].mxu1 }
 0x17b   :  { %782 = vst.msk [vmem:[%s1807_s3 + $0xf8] sm:$0xff] %vm750_vm2, %v587_v29  ;;  %814 = vst.msk [vmem:[%s1807_s3 + $0x1f8] sm:$0xff] %vm750_vm2, %v747_v31 }

</bundles_post_ra>
